<compile_context>
chip_gen: v7x
topology: tpu7x:2x2x1
jax: 0.10.0
libtpu: 0.0.40
codegen_flags: <defaults>
</compile_context>

<pallas_src>
import jax
import jax.numpy as jnp
from jax.experimental import pallas as pl
from jax.experimental.pallas import tpu as pltpu

MAX_LENGTH = 128
PAD_ID = 0        # BERT-style special token ids
UNK_ID = 100
CLS_ID = 101
SEP_ID = 102
VOCAB_SIZE = 30522


def _tokenize_kernel(tok_ref, len_ref, ids_ref, mask_ref):
    """Pad / truncate / add special tokens / build attention mask.

    tok_ref : [TB, 128] int32  raw word ids (host pre-tokenized), zero padded
    len_ref : [TB, 1]   int32  number of valid word ids per row
    ids_ref : [TB, 128] int32  input_ids     ([CLS] w0..w_{c-1} [SEP] PAD...)
    mask_ref: [TB, 128] int32  attention_mask
    """
    B, L = ids_ref.shape                                   # L == MAX_LENGTH
    toks = tok_ref[...]                                    # already the 128-col window
    # Shift content right by one lane so it lands after the [CLS] slot.
    # NOTE: pltpu.roll wraps lane L-1 into lane 0; that wrapped value is
    # masked out by the `pos == 0 -> CLS_ID` branch below, which MUST stay
    # the outermost where() of the chain.
    shifted = pltpu.roll(toks, shift=1, axis=1)            # shifted[:, j] = toks[:, j-1]

    pos = jax.lax.broadcasted_iota(jnp.int32, (B, L), 1)   # column index
    c = jnp.minimum(len_ref[...], L - 2)                   # (B,1) content len after trunc
    cp1 = c + 1                                            # reuse for ids and mask

    ids = jnp.where(pos == 0, CLS_ID,
          jnp.where(pos <= c, shifted,
          jnp.where(pos == cp1, SEP_ID, PAD_ID)))

    ids_ref[...] = ids.astype(jnp.int32)
    mask_ref[...] = (pos <= cp1).astype(jnp.int32)         # == (pos < c + 2)


def sentence_tokenizer_forward(token_ids: jax.Array, lengths: jax.Array,
                               *, tile_b: int = 256):
    """token_ids: [B, L_in] int32 (L_in >= 128, multiple of 128),
       lengths  : [B, 1]    int32."""
    B, L_in = token_ids.shape
    assert L_in >= MAX_LENGTH and L_in % 128 == 0

    # Batch tile: multiple of 8 sublanes, no larger than needed for small B.
    tile_b = min(tile_b, max(8, ((B + 7) // 8) * 8))
    Bp = ((B + tile_b - 1) // tile_b) * tile_b
    if Bp != B:
        token_ids = jnp.pad(token_ids, ((0, Bp - B), (0, 0)))
        lengths = jnp.pad(lengths, ((0, Bp - B), (0, 0)))

    grid = (Bp // tile_b,)
    out_shapes = (
        jax.ShapeDtypeStruct((Bp, MAX_LENGTH), jnp.int32),  # input_ids
        jax.ShapeDtypeStruct((Bp, MAX_LENGTH), jnp.int32),  # attention_mask
    )
    tok_spec = pl.BlockSpec((tile_b, MAX_LENGTH), lambda i: (i, 0))  # only cols [0,128)
    len_spec = pl.BlockSpec((tile_b, 1), lambda i: (i, 0))
    out_spec = pl.BlockSpec((tile_b, MAX_LENGTH), lambda i: (i, 0))

    bytes_in = Bp * MAX_LENGTH * 4 + Bp * 4
    bytes_out = 2 * Bp * MAX_LENGTH * 4
    input_ids, attention_mask = pl.pallas_call(
        _tokenize_kernel,
        out_shape=out_shapes,
        grid=grid,
        in_specs=[tok_spec, len_spec],
        out_specs=(out_spec, out_spec),
        compiler_params=pltpu.CompilerParams(
            dimension_semantics=("parallel",)),
        cost_estimate=pl.CostEstimate(
            flops=5 * Bp * MAX_LENGTH,
            transcendentals=0,
            bytes_accessed=bytes_in + bytes_out),
    )(token_ids, lengths)

    input_ids = input_ids[:B]
    attention_mask = attention_mask[:B]
    # token_type_ids is a constant (single segment) — cheaper outside the kernel.
    token_type_ids = jnp.zeros((B, MAX_LENGTH), jnp.int32)
    return input_ids, attention_mask, token_type_ids


# ----------------------------------------------------------------------------
# Host-side glue emulating the string portion of the HuggingFace tokenizer.
# TODO(synk): AutoTokenizer's BPE/vocab lookup and special-token string
# replacement are string ops with no Pallas equivalent; emulated with a
# deterministic whitespace split + polynomial-hash "vocabulary".
# ----------------------------------------------------------------------------
_SPECIAL_TOKEN_MAP = {
    "<s>": "bos", "</s>": "eos", "[CLS]": "cls",
    "[SEP]": "sep", "[MASK]": "mask", "[UNK]": "unk",
}


def _word_id(word: str) -> int:
    h = 0
    for ch in word:
        h = (h * 131 + ord(ch)) % (VOCAB_SIZE - 1000)
    return 999 + h  # keep clear of special-token id range


def host_pretokenize(lines, buf_len):
    ids, lens = [], []
    for line in lines:
        for key, value in _SPECIAL_TOKEN_MAP.items():
            line = line.replace(key, value)
        words = line.split()
        row = [_word_id(w) for w in words][:buf_len]
        lens.append(len(row))
        ids.append(row + [0] * (buf_len - len(row)))
    return (jnp.asarray(ids, jnp.int32),
            jnp.asarray(lens, jnp.int32).reshape(-1, 1))


if __name__ == "__main__":
    key = jax.random.PRNGKey(0)  # deterministic seed (kernel itself is deterministic)

    # Small batch of sentences; the second exercises truncation (>126 words).
    lines = [
        "hello world [CLS] this is a [MASK] test </s>",
        " ".join(f"tok{i}" for i in range(200)),
    ]
    B = len(lines)
    L_IN = 256  # host buffer length, multiple of 128, >= MAX_LENGTH

    token_ids, lengths = host_pretokenize(lines, L_IN)

    input_ids, attention_mask, token_type_ids = jax.block_until_ready(
        sentence_tokenizer_forward(token_ids, lengths)
    )

    # Sanity checks mirroring HF tokenizer(padding='max_length', truncation=True, max_length=128).
    assert input_ids.shape == (B, MAX_LENGTH)
    assert attention_mask.shape == (B, MAX_LENGTH)
    assert token_type_ids.shape == (B, MAX_LENGTH)
    assert int(input_ids[0, 0]) == CLS_ID
    n0 = int(lengths[0, 0])
    assert int(input_ids[0, n0 + 1]) == SEP_ID
    assert int(attention_mask[0].sum()) == n0 + 2
    # Content tokens of row 0 survive in order after the [CLS] shift.
    assert input_ids[0, 1:n0 + 1].tolist() == token_ids[0, :n0].tolist()
    # truncated row: exactly 126 content tokens + CLS + SEP, full mask
    assert int(attention_mask[1].sum()) == MAX_LENGTH
    assert int(input_ids[1, MAX_LENGTH - 1]) == SEP_ID
    assert int(token_type_ids.sum()) == 0

    print("KERNEL_OK")
</pallas_src>

<mosaic_0001>
module attributes {stable_mosaic.version = 11 : i64} {
  func.func @_tokenize_kernel(%arg0: i32, %arg1: memref<8x128xi32, #tpu.memory_space<vmem>>, %arg2: memref<8x1xi32, #tpu.memory_space<vmem>>, %arg3: memref<8x128xi32, #tpu.memory_space<vmem>>, %arg4: memref<8x128xi32, #tpu.memory_space<vmem>>) attributes {dimension_semantics = [#tpu.dimension_semantics<parallel>], iteration_bounds = array<i64: 1>, scalar_prefetch = 0 : i64, scratch_operands = 0 : i64, tpu.core_type = #tpu.core_type<tc>, window_params = [{transform_indices = @transform_0, window_bounds = array<i64: 8, 128>}, {transform_indices = @transform_1, window_bounds = array<i64: 8, 1>}, {transform_indices = @transform_2, window_bounds = array<i64: 8, 128>}, {transform_indices = @transform_3, window_bounds = array<i64: 8, 128>}]} {
    %c0 = arith.constant 0 : index
    %c0_0 = arith.constant 0 : index
    %0 = vector.load %arg1[%c0, %c0_0] : memref<8x128xi32, #tpu.memory_space<vmem>>, vector<8x128xi32>
    %c1_i32 = arith.constant 1 : i32
    %1 = tpu.dynamic_rotate %0 by %c1_i32 dim 1 : vector<8x128xi32>, i32 -> vector<8x128xi32>
    %2 = tpu.iota {dimensions = array<i32: 1>} : vector<8x128xi32>
    %c0_1 = arith.constant 0 : index
    %c0_2 = arith.constant 0 : index
    %3 = vector.load %arg2[%c0_1, %c0_2] : memref<8x1xi32, #tpu.memory_space<vmem>>, vector<8x1xi32>
    %c126_i32 = arith.constant 126 : i32
    %4 = vector.broadcast %c126_i32 : i32 to vector<8x1xi32>
    %5 = arith.minsi %3, %4 : vector<8x1xi32>
    %c1_i32_3 = arith.constant 1 : i32
    %6 = vector.broadcast %c1_i32_3 : i32 to vector<8x1xi32>
    %7 = arith.addi %5, %6 : vector<8x1xi32>
    %c0_i32 = arith.constant 0 : i32
    %8 = vector.broadcast %c0_i32 : i32 to vector<8x128xi32>
    %9 = arith.cmpi eq, %2, %8 : vector<8x128xi32>
    %10 = vector.broadcast %5 : vector<8x1xi32> to vector<8x128xi32>
    %11 = arith.cmpi sle, %2, %10 : vector<8x128xi32>
    %12 = vector.broadcast %7 : vector<8x1xi32> to vector<8x128xi32>
    %13 = arith.cmpi eq, %2, %12 : vector<8x128xi32>
    %c102_i32 = arith.constant 102 : i32
    %c0_i32_4 = arith.constant 0 : i32
    %14 = vector.broadcast %c102_i32 : i32 to vector<8x128xi32>
    %15 = vector.broadcast %c0_i32_4 : i32 to vector<8x128xi32>
    %16 = arith.select %13, %14, %15 : vector<8x128xi1>, vector<8x128xi32>
    %17 = arith.select %11, %1, %16 : vector<8x128xi1>, vector<8x128xi32>
    %c101_i32 = arith.constant 101 : i32
    %18 = vector.broadcast %c101_i32 : i32 to vector<8x128xi32>
    %19 = arith.select %9, %18, %17 : vector<8x128xi1>, vector<8x128xi32>
    %c0_5 = arith.constant 0 : index
    %c0_6 = arith.constant 0 : index
    %20 = vector.load %arg3[%c0_5, %c0_6] : memref<8x128xi32, #tpu.memory_space<vmem>>, vector<8x128xi32>
    tpu.vector_store %arg3[%c0_5, %c0_6], %19 {strides = array<i32>} : memref<8x128xi32, #tpu.memory_space<vmem>>, vector<8x128xi32>,
    %21 = vector.broadcast %7 : vector<8x1xi32> to vector<8x128xi32>
    %22 = arith.cmpi sle, %2, %21 : vector<8x128xi32>
    %23 = arith.extui %22 : vector<8x128xi1> to vector<8x128xi32>
    %c0_7 = arith.constant 0 : index
    %c0_8 = arith.constant 0 : index
    %24 = vector.load %arg4[%c0_7, %c0_8] : memref<8x128xi32, #tpu.memory_space<vmem>>, vector<8x128xi32>
    tpu.vector_store %arg4[%c0_7, %c0_8], %23 {strides = array<i32>} : memref<8x128xi32, #tpu.memory_space<vmem>>, vector<8x128xi32>,
    return
  }
  func.func @transform_0(%arg0: i32) -> (i32, i32) {
    %c0_i32 = arith.constant 0 : i32
    %c0_i32_0 = arith.constant 0 : i32
    return %arg0, %c0_i32 : i32, i32
  }
  func.func @transform_1(%arg0: i32) -> (i32, i32) {
    %c0_i32 = arith.constant 0 : i32
    %c0_i32_0 = arith.constant 0 : i32
    return %arg0, %c0_i32 : i32, i32
  }
  func.func @transform_2(%arg0: i32) -> (i32, i32) {
    %c0_i32 = arith.constant 0 : i32
    %c0_i32_0 = arith.constant 0 : i32
    return %arg0, %c0_i32 : i32, i32
  }
  func.func @transform_3(%arg0: i32) -> (i32, i32) {
    %c0_i32 = arith.constant 0 : i32
    %c0_i32_0 = arith.constant 0 : i32
    return %arg0, %c0_i32 : i32, i32
  }
}

</mosaic_0001>

<bundles_post_ra>
// kernel: tpu_custom_call.1
= control target key start
LH: loop header
LB: loop body
LE: loop exit
PB: predicated region body
PF: predicated region fallthrough
CT: control target
= control target key end

     0   :  { %9 = vsyncpa [#allocation3], 0  ;;  %s228_s0 = inlined_call_operand.hbm [shape: s32[8,256], index: 0, kind: input, shape index: {}]   ;;  %s229_s1 = inlined_call_operand.vmem [shape: s32[8,1], index: 1, kind: input, shape index: {}]   ;;  %s230_s2 = inlined_call_operand.hbm [shape: s32[8,128], index: 2, kind: output, shape index: {0}]   ;;  %s231_s3 = inlined_call_operand.hbm [shape: s32[8,128], index: 3, kind: output, shape index: {1}]  }
   0x1   :  { %10 = vsyncpa [#allocation4], 0 }
   0x2   :  { %11 = vsyncpa [#allocation7], 0  ;;  %s159_s12 = smov [#allocation2]   ;;  %s87_s16 = scalar_lea.hbm %s228_s0, 128 }
   0x3   :  { %s18_s13 = sshll.u32 %s159_s12, 4  ;;  %p88_p0 = scmp.ne.s32.totalorder %s228_s0, %s87_s16  ;;  %s19_s13 = int_to_ptr.vmem [resolvable:$true] %s18_s13 }
   0x4   :  { %s89_s21 = scalar_lea.hbm %s228_s0, 256  ;;  %p91_p2 = scmp.lt.u32.totalorder %s87_s16, %s228_s0 }
   0x5   :  { %p90_p1 = scmp.lt.u32.totalorder %s89_s21, %s87_s16 }
   0x7   :  { %p92_p3 = por %p91_p2, %p90_p1 }
   0x9   :  { %p93_p4 = pnand %p92_p3, %p88_p0 }
   0xb   :  { %96 = shalt.err (!%p93_p4)
}
   0xc   :  { %s97_s24 = scalar_lea.vmem %s19_s13, 128  ;;  %p102_p6 = scmp.lt.s32.totalorder %s19_s13, %s19_s13 }
   0xd   :  { %p98_p5 = scmp.ne.s32.totalorder %s19_s13, %s97_s24  ;;  %p103_p7 = scmp.lt.s32.totalorder %s97_s24, %s97_s24 }
   0xf   :  { %p104_p8 = por %p103_p7, %p102_p6 }
  0x11   :  { %p105_p9 = pnand %p104_p8, %p98_p5 }
  0x13   :  { %108 = shalt.err (!%p105_p9)
}
  0x14   :  { %21 = dma.hbm_to_vmem [thread:$0]  %s228_s0, 128, %s19_s13, [#allocation3]  }
  0x15   :  { %153 = dma.done.wait [#allocation3], 128  }
  0x16   :  { %154 = vsyncadd [#allocation3], 4294967168  ;;  %v160_v0 = vmov 0   ;;  %v32_v1 = vld [vmem:[%s229_s1] sm:$0xff]  ;;  %s161_s29 = smov 1   ;;  %v30_v5 = vlaneseq  ;;  %s162_s30 = smov [#allocation6]  }
  0x17   :  { %86 = vset.pattern.permute.xlu0 %v160_v0  ;;  %v27_v2 = vld [vmem:[#allocation2] sm:$0xff]  ;;  %vm33_vm0 = vcmp.lt.s32.totalorder %v32_v1, 126  ;;  %s68_s0 = sshll.u32 %s162_s30, 4  ;;  %s163_s4 = smov [#allocation5]   ;;  %s69_s0 = int_to_ptr.vmem [resolvable:$true] %s68_s0 }
  0x18   :  { %28 = vrot.lane.b32.xlu1 %v27_v2, %s161_s29  ;;  %v34_v3 = vsel %vm33_vm0, %v32_v1, 126  ;;  %v31_v6 = vand.u32 127, %v30_v5  ;;  %s58_s1 = sshll.u32 %s163_s4, 4  ;;  %s109_s5 = scalar_lea.vmem %s69_s0, 128  ;;  %s59_s1 = int_to_ptr.vmem [resolvable:$true] %s58_s1 }
  0x19   :  { %v35_v4 = vadd.s32 1, %v34_v3  ;;  %p110_p10 = scmp.ne.s32.totalorder %s69_s0, %s109_s5  ;;  %p114_p11 = scmp.lt.s32.totalorder %s69_s0, %s69_s0 }
  0x1a   :  { %vm36_vm3 = vcmp.eq.s32.totalorder %v31_v6, 0  ;;  %p115_p12 = scmp.lt.s32.totalorder %s109_s5, %s109_s5 }
  0x1b   :  { %42 = vperm.xlu0 %86, %v35_v4  }
  0x1c   :  { %p116_p13 = por %p115_p12, %p114_p11 }
  0x1e   :  { %p117_p0 = pnand %p116_p13, %p110_p10 }
  0x1f   :  { %38 = vperm.xlu0 %86, %v34_v3  }
  0x8a   :  { %v29_v9 = vpop.permute.xlu1 %28 }
  0x9a   :  { %v43_v7 = vpop.permute.xlu0 %42 }
  0x9b   :  { %vm49_vm1 = vcmp.le.s32.totalorder %v31_v6, %v43_v7  ;;  %vm44_vm2 = vcmp.eq.s32.totalorder %v31_v6, %v43_v7 }
  0x9c   :  { %v50_v8 = vsel %vm49_vm1, 1, %v160_v0 }
  0x9d   :  { %51 = vst [vmem:[#allocation6] sm:$0xff] %v50_v8 }
  0x9e   :  { %v39_v10 = vpop.permute.xlu0 %38 }
  0x9f   :  { %120 = shalt.err (!%p117_p0)
}
  0xa0   :  { %s121_s8 = scalar_lea.hbm %s231_s3, 128 }
  0xa1   :  { %p122_p1 = scmp.ne.s32.totalorder %s231_s3, %s121_s8  ;;  %p125_p2 = scmp.lt.u32.totalorder %s121_s8, %s231_s3 }
  0xa3   :  { %p127_p3 = pnand %p125_p2, %p122_p1 }
  0xa5   :  { %130 = shalt.err (!%p127_p3)
}
  0xa6   :  { %71 = dma.vmem_to_hbm [thread:$0]  %s69_s0, 128, %s231_s3, [#allocation7]   ;;  %v45_v11 = vsel %vm44_vm2, 102, %v160_v0  ;;  %vm40_vm4 = vcmp.le.s32.totalorder %v31_v6, %v39_v10 }
  0xa7   :  { %v46_v12 = vsel %vm40_vm4, %v29_v9, %v45_v11  ;;  %s131_s15 = scalar_lea.vmem %s59_s1, 128  ;;  %p136_p5 = scmp.lt.s32.totalorder %s59_s1, %s59_s1 }
  0xa8   :  { %v47_v13 = vsel %vm36_vm3, 101, %v46_v12  ;;  %p132_p4 = scmp.ne.s32.totalorder %s59_s1, %s131_s15  ;;  %p137_p6 = scmp.lt.s32.totalorder %s131_s15, %s131_s15 }
  0xa9   :  { %48 = vst [vmem:[#allocation5] sm:$0xff] %v47_v13 }
  0xaa   :  { %p138_p7 = por %p137_p6, %p136_p5 }
  0xac   :  { %p139_p8 = pnand %p138_p7, %p132_p4 }
  0xae   :  { %142 = shalt.err (!%p139_p8)
}
  0xaf   :  { %s143_s18 = scalar_lea.hbm %s230_s2, 128 }
  0xb0   :  { %p144_p9 = scmp.ne.s32.totalorder %s230_s2, %s143_s18  ;;  %p147_p10 = scmp.lt.u32.totalorder %s143_s18, %s230_s2 }
  0xb2   :  { %p149_p11 = pnand %p147_p10, %p144_p9 }
  0xb4   :  { %152 = shalt.err (!%p149_p11)
}
  0xb5   :  { %61 = dma.vmem_to_hbm [thread:$0]  %s59_s1, 128, %s230_s2, [#allocation4]  }
  0xb6   :  { %155 = dma.done.wait [#allocation4], 128  }
  0xb7   :  { %156 = vsyncadd [#allocation4], 4294967168 }
  0xb8   :  { %157 = dma.done.wait [#allocation7], 128  }
  0xb9   :  { %158 = vsyncadd [#allocation7], 4294967168 }
  0xba   :  { %78 = vsyncpa [#allocation3], 1 }
  0xbb   :  { %79 = vsyncpa [#allocation4], 1 }
  0xbc   :  { %80 = vsyncpa [#allocation7], 1 }

</bundles_post_ra>
